<compile_context>
chip_gen: v7x
topology: tpu7x:2x2x1
jax: 0.10.0
libtpu: 0.0.40
codegen_flags: <defaults>
</compile_context>

<pallas_src>
import functools

import jax
import jax.numpy as jnp
from jax.experimental import pallas as pl
from jax.experimental.pallas import tpu as pltpu

PAD = 128  # lane-dense padded width for the feature / class / embedding axes


def _round_up(v, m):
    return ((v + m - 1) // m) * m


# ----------------------------------------------------------------------------
# Fused kernel: im2col -> ONE 2-D conv matmul -> relu -> masked mean pool ->
# Highway -> Linear -> log_softmax.
# ----------------------------------------------------------------------------
def _fused_kernel(x_ref, wconv_ref, wgh_ref, wff_ref, bias_ref, mask_ref,
                  o_ref, im2col_ref, *, wmax, l_pos, dot_dtype):
    # x_ref:      (TB, L_pad, D_pad) f32   zero-padded, lane-dense input window
    # wconv_ref:  (wmax*D_pad, 128)        packed conv weights (dot_dtype)
    # wgh_ref:    (128, 256)               [Wg | Wh] highway weights (dot_dtype)
    # wff_ref:    (128, 128)               padded feedforward weights (dot_dtype)
    # bias_ref:   (4, 128) f32             rows: conv_b, hw_bg, hw_bh, ff_b(-1e30 pad)
    # mask_ref:   (L_pos, 128) f32         1/l_out at valid positions, else 0
    # o_ref:      (TB, 128) f32            log-probs (cols >= num_class garbage)
    # im2col_ref: (TB, L_pos, wmax*D_pad) f32  VMEM scratch
    tb = x_ref.shape[0]
    d_pad = x_ref.shape[2]
    kc_pad = im2col_ref.shape[2]

    # ---- im2col: every tap writes a full-lane, 128-aligned slab; the scratch is
    #      fully overwritten each step (no K tail, no uninitialized reads) ----
    for w in range(wmax):                                  # static unroll over taps
        im2col_ref[:, :, w * d_pad:(w + 1) * d_pad] = x_ref[:, w:w + l_pos, :]

    # ---- ALL conv branches as ONE 2-D MXU matmul:
    #      M = TB*L_pos, K = wmax*D_pad, N = 128 (f32 accumulate) ----
    m = tb * l_pos
    im2col = im2col_ref[...].reshape(m, kc_pad).astype(dot_dtype)
    s = jnp.dot(im2col, wconv_ref[...], preferred_element_type=jnp.float32)
    s = jnp.maximum(s + bias_ref[0, :], 0.0).reshape(tb, l_pos, PAD)
    # masked mean over valid positions (mask already carries 1/l_out per branch)
    pooled = jnp.sum(s * mask_ref[...], axis=1)                       # (TB, 128) f32

    # ---- Highway (1 layer): gate & carry matmuls fused into one dot ----
    gh = jnp.dot(pooled.astype(dot_dtype), wgh_ref[...],
                 preferred_element_type=jnp.float32)                  # (TB, 256)
    g = jax.nn.sigmoid(gh[:, :PAD] + bias_ref[1, :])
    h = jnp.maximum(gh[:, PAD:] + bias_ref[2, :], 0.0)
    hw = g * h + (1.0 - g) * pooled

    # ---- dropout (identity, inference) -> Linear -> log_softmax ----
    logits = jnp.dot(hw.astype(dot_dtype), wff_ref[...],
                     preferred_element_type=jnp.float32)
    logits = logits + bias_ref[3, :]          # padded cols carry -1e30 -> exp()==0
    mx = jnp.max(logits, axis=-1, keepdims=True)
    lse = mx + jnp.log(jnp.sum(jnp.exp(logits - mx), axis=-1, keepdims=True))
    o_ref[...] = logits - lse                                         # full-lane store


# ----------------------------------------------------------------------------
# One-time parameter packing (lane-dense, zero-padded).
# ----------------------------------------------------------------------------
def pack_params(params, *, kernel_sizes, kernel_nums, input_dim, num_class,
                dot_dtype=jnp.float32):
    feat = sum(kernel_nums)
    assert feat <= PAD and num_class <= PAD, "increase PAD for larger models"
    wmax = max(kernel_sizes)
    d_pad = _round_up(input_dim, PAD)
    kc_pad = wmax * d_pad

    wconv = jnp.zeros((kc_pad, PAD), jnp.float32)
    bias = jnp.zeros((4, PAD), jnp.float32)
    col = 0
    for i, (ks, cn) in enumerate(zip(kernel_sizes, kernel_nums)):
        w = params["conv_w"][i]                      # (ks, D, cn)
        for t in range(ks):                          # tap t -> rows [t*d_pad, t*d_pad+D)
            wconv = wconv.at[t * d_pad: t * d_pad + input_dim,
                             col:col + cn].set(w[t])
        bias = bias.at[0, col:col + cn].set(params["conv_b"][i][0])
        col += cn
    bias = bias.at[1, :feat].set(params["hw_bg"][0])
    bias = bias.at[2, :feat].set(params["hw_bh"][0])
    bias = bias.at[3, :num_class].set(params["ff_b"][0])
    bias = bias.at[3, num_class:].set(-1e30)   # kill padded logit cols (bias stays f32)

    wgh = jnp.zeros((PAD, 2 * PAD), jnp.float32)
    wgh = wgh.at[:feat, :feat].set(params["hw_wg"])
    wgh = wgh.at[:feat, PAD:PAD + feat].set(params["hw_wh"])

    wff = jnp.zeros((PAD, PAD), jnp.float32)
    wff = wff.at[:feat, :num_class].set(params["ff_w"])

    return {"wconv": wconv.astype(dot_dtype), "wgh": wgh.astype(dot_dtype),
            "wff": wff.astype(dot_dtype), "bias": bias}


# ----------------------------------------------------------------------------
# Batch-tile selection (MXU fill vs. VMEM vs. v7x dual-TC sharding).
# ----------------------------------------------------------------------------
def _pick_batch_tile(batch, l_pos, m_cap=2048):
    # Cap the conv-matmul M = tb*l_pos at m_cap so the f32 intermediates never
    # need inner chunking and VMEM stays <~10 MiB on every generation.
    tb_cap = max(8, (m_cap // max(l_pos, 1)) // 8 * 8)   # 128 when l_pos == 16
    if batch > tb_cap:
        return tb_cap                                    # nb >= 2 automatically
    if batch >= 128:           # big enough to split across both v7x TCs (>=64 rows each)
        return _round_up((batch + 1) // 2, 8)
    return batch               # single tile; block dim == full array dim is legal


# ----------------------------------------------------------------------------
# Forward pass: pad x (seq + lane-dense embedding), build pooling mask,
# one pallas_call, thin output slice.
# ----------------------------------------------------------------------------
def cnn_classifier_forward(x, packed, *, kernel_sizes, kernel_nums, num_class,
                           max_kernel_size, dot_dtype=jnp.float32):
    B, L, D = x.shape
    wmax = max(kernel_sizes)
    d_pad = _round_up(D, PAD)
    l_eff = max(L, max_kernel_size)       # torch pads sequences up to max_kernel_size
    l_pos = l_eff                         # im2col positions (invalid ones masked out)
    l_pad = l_eff + wmax - 1              # extra zero rows so every tap slice is in range
    kc_pad = wmax * d_pad

    # lane-dense input: zero-pad the sequence and the embedding dim to 128
    x_pad = jnp.pad(x, ((0, 0), (0, l_pad - L), (0, d_pad - D)))

    # pooling mask: mask[t, c] = 1/l_out(branch of c) for valid t, else 0
    mask = jnp.zeros((l_pos, PAD), jnp.float32)
    col = 0
    for ks, cn in zip(kernel_sizes, kernel_nums):
        l_out = l_eff - ks + 1
        mask = mask.at[:l_out, col:col + cn].set(1.0 / l_out)
        col += cn

    tb = _pick_batch_tile(B, l_pos)
    nb = pl.cdiv(B, tb)

    kern = functools.partial(_fused_kernel, wmax=wmax, l_pos=l_pos,
                             dot_dtype=dot_dtype)
    grid_spec = pltpu.PrefetchScalarGridSpec(
        num_scalar_prefetch=0,
        grid=(nb,),
        in_specs=[
            pl.BlockSpec((tb, l_pad, d_pad), lambda i: (i, 0, 0)),
            pl.BlockSpec((kc_pad, PAD), lambda i: (0, 0)),
            pl.BlockSpec((PAD, 2 * PAD), lambda i: (0, 0)),
            pl.BlockSpec((PAD, PAD), lambda i: (0, 0)),
            pl.BlockSpec((4, PAD), lambda i: (0, 0)),
            pl.BlockSpec((l_pos, PAD), lambda i: (0, 0)),
        ],
        out_specs=pl.BlockSpec((tb, PAD), lambda i: (i, 0)),
        scratch_shapes=[pltpu.VMEM((tb, l_pos, kc_pad), jnp.float32)],
    )
    out_full = pl.pallas_call(
        kern,
        out_shape=jax.ShapeDtypeStruct((B, PAD), jnp.float32),
        grid_spec=grid_spec,
        compiler_params=pltpu.CompilerParams(
            dimension_semantics=("parallel",)),
    )(x_pad, packed["wconv"], packed["wgh"], packed["wff"],
      packed["bias"], mask)
    return out_full[:, :num_class]        # lane-dense kernel output, thin slice here


# ----------------------------------------------------------------------------
# Pure-JAX reference (mirrors the PyTorch module) for a correctness check.
# ----------------------------------------------------------------------------
def reference_forward(x, params, *, kernel_sizes, max_kernel_size):
    B, L, D = x.shape
    if L < max_kernel_size:
        x = jnp.pad(x, ((0, 0), (0, max_kernel_size - L), (0, 0)))
    Lp = x.shape[1]
    pooled = []
    for i, ks in enumerate(kernel_sizes):
        w, b = params["conv_w"][i], params["conv_b"][i]
        l_out = Lp - ks + 1
        acc = jnp.zeros((B, l_out, w.shape[2]), jnp.float32)
        for t in range(ks):
            acc += jnp.einsum("bld,dc->blc", x[:, t: t + l_out, :], w[t])
        pooled.append(jnp.mean(jnp.maximum(acc + b[0], 0.0), axis=1))
    feat = jnp.concatenate(pooled, axis=-1)
    g = jax.nn.sigmoid(feat @ params["hw_wg"] + params["hw_bg"][0])
    h = jnp.maximum(feat @ params["hw_wh"] + params["hw_bh"][0], 0.0)
    hw = g * h + (1.0 - g) * feat
    logits = hw @ params["ff_w"] + params["ff_b"][0]
    return jax.nn.log_softmax(logits, axis=-1)


if __name__ == "__main__":
    # Module hyper-parameters (small, consistent with the forward pass).
    num_class = 8
    input_dim = 32          # D
    kernel_nums = [8, 8, 16]
    kernel_sizes = [3, 4, 5]
    max_kernel_size = 16
    batch, seq = 2, 8       # seq < max_kernel_size -> zero-padded to 16
    feat_dim = sum(kernel_nums)  # 32

    key = jax.random.PRNGKey(0)
    keys = jax.random.split(key, 16)

    params = {
        "conv_w": [
            0.1 * jax.random.normal(keys[i], (ks, input_dim, cn), jnp.float32)
            for i, (cn, ks) in enumerate(zip(kernel_nums, kernel_sizes))
        ],
        "conv_b": [
            0.1 * jax.random.normal(keys[3 + i], (1, cn), jnp.float32)
            for i, cn in enumerate(kernel_nums)
        ],
        "hw_wg": 0.1 * jax.random.normal(keys[6], (feat_dim, feat_dim), jnp.float32),
        "hw_bg": 0.1 * jax.random.normal(keys[7], (1, feat_dim), jnp.float32),
        "hw_wh": 0.1 * jax.random.normal(keys[8], (feat_dim, feat_dim), jnp.float32),
        "hw_bh": 0.1 * jax.random.normal(keys[9], (1, feat_dim), jnp.float32),
        "ff_w": 0.1 * jax.random.normal(keys[10], (feat_dim, num_class), jnp.float32),
        "ff_b": 0.1 * jax.random.normal(keys[11], (1, num_class), jnp.float32),
    }

    x = jax.random.normal(keys[12], (batch, seq, input_dim), jnp.float32)

    ref = reference_forward(x, params, kernel_sizes=kernel_sizes,
                            max_kernel_size=max_kernel_size)

    # ---- float32 run: tight numerical check vs. the reference ----
    packed32 = pack_params(params, kernel_sizes=kernel_sizes,
                           kernel_nums=kernel_nums, input_dim=input_dim,
                           num_class=num_class, dot_dtype=jnp.float32)
    fwd32 = jax.jit(functools.partial(
        cnn_classifier_forward, kernel_sizes=kernel_sizes,
        kernel_nums=kernel_nums, num_class=num_class,
        max_kernel_size=max_kernel_size, dot_dtype=jnp.float32))
    out32 = jax.block_until_ready(fwd32(x, packed32))
    assert out32.shape == (batch, num_class)
    assert jnp.allclose(out32, ref, atol=1e-4, rtol=1e-4), "f32 mismatch vs reference"

    # ---- bf16-dot-operand run (v6e/v7x fast path; f32 accumulate/elementwise) ----
    packed16 = pack_params(params, kernel_sizes=kernel_sizes,
                           kernel_nums=kernel_nums, input_dim=input_dim,
                           num_class=num_class, dot_dtype=jnp.bfloat16)
    fwd16 = jax.jit(functools.partial(
        cnn_classifier_forward, kernel_sizes=kernel_sizes,
        kernel_nums=kernel_nums, num_class=num_class,
        max_kernel_size=max_kernel_size, dot_dtype=jnp.bfloat16))
    out16 = jax.block_until_ready(fwd16(x, packed16))
    assert out16.shape == (batch, num_class)
    assert bool(jnp.all(jnp.isfinite(out16)))
    assert jnp.allclose(out16, ref, atol=5e-2, rtol=5e-2), "bf16 mismatch vs reference"

    print("KERNEL_OK")
</pallas_src>

<mosaic_0001>
module attributes {stable_mosaic.version = 11 : i64} {
  func.func @_fused_kernel(%arg0: i32, %arg1: memref<2x20x128xf32, #tpu.memory_space<vmem>>, %arg2: memref<640x128xf32, #tpu.memory_space<vmem>>, %arg3: memref<128x256xf32, #tpu.memory_space<vmem>>, %arg4: memref<128x128xf32, #tpu.memory_space<vmem>>, %arg5: memref<4x128xf32, #tpu.memory_space<vmem>>, %arg6: memref<16x128xf32, #tpu.memory_space<vmem>>, %arg7: memref<2x128xf32, #tpu.memory_space<vmem>>, %arg8: memref<2x16x640xf32, #tpu.memory_space<vmem>>) attributes {dimension_semantics = [#tpu.dimension_semantics<parallel>], iteration_bounds = array<i64: 1>, scalar_prefetch = 0 : i64, scratch_operands = 1 : i64, tpu.core_type = #tpu.core_type<tc>, window_params = [{transform_indices = @transform_0, window_bounds = array<i64: 2, 20, 128>}, {pipeline_mode = #tpu.pipeline_mode<synchronous>, transform_indices = @transform_1, window_bounds = array<i64: 640, 128>}, {pipeline_mode = #tpu.pipeline_mode<synchronous>, transform_indices = @transform_2, window_bounds = array<i64: 128, 256>}, {pipeline_mode = #tpu.pipeline_mode<synchronous>, transform_indices = @transform_3, window_bounds = array<i64: 128, 128>}, {pipeline_mode = #tpu.pipeline_mode<synchronous>, transform_indices = @transform_4, window_bounds = array<i64: 4, 128>}, {pipeline_mode = #tpu.pipeline_mode<synchronous>, transform_indices = @transform_5, window_bounds = array<i64: 16, 128>}, {transform_indices = @transform_6, window_bounds = array<i64: 2, 128>}]} {
    %c0 = arith.constant 0 : index
    %c0_0 = arith.constant 0 : index
    %c0_1 = arith.constant 0 : index
    %0 = vector.load %arg1[%c0, %c0_0, %c0_1] : memref<2x20x128xf32, #tpu.memory_space<vmem>>, vector<2x16x128xf32>
    %c0_2 = arith.constant 0 : index
    %c0_3 = arith.constant 0 : index
    %c0_4 = arith.constant 0 : index
    %1 = vector.load %arg8[%c0_2, %c0_3, %c0_4] : memref<2x16x640xf32, #tpu.memory_space<vmem>>, vector<2x16x128xf32>
    tpu.vector_store %arg8[%c0_2, %c0_3, %c0_4], %0 {strides = array<i32>} : memref<2x16x640xf32, #tpu.memory_space<vmem>>, vector<2x16x128xf32>,
    %c0_5 = arith.constant 0 : index
    %c1 = arith.constant 1 : index
    %c0_6 = arith.constant 0 : index
    %2 = vector.load %arg1[%c0_5, %c1, %c0_6] : memref<2x20x128xf32, #tpu.memory_space<vmem>>, vector<2x16x128xf32>
    %c0_7 = arith.constant 0 : index
    %c0_8 = arith.constant 0 : index
    %c128 = arith.constant 128 : index
    %3 = vector.load %arg8[%c0_7, %c0_8, %c128] : memref<2x16x640xf32, #tpu.memory_space<vmem>>, vector<2x16x128xf32>
    tpu.vector_store %arg8[%c0_7, %c0_8, %c128], %2 {strides = array<i32>} : memref<2x16x640xf32, #tpu.memory_space<vmem>>, vector<2x16x128xf32>,
    %c0_9 = arith.constant 0 : index
    %c2 = arith.constant 2 : index
    %c0_10 = arith.constant 0 : index
    %4 = vector.load %arg1[%c0_9, %c2, %c0_10] : memref<2x20x128xf32, #tpu.memory_space<vmem>>, vector<2x16x128xf32>
    %c0_11 = arith.constant 0 : index
    %c0_12 = arith.constant 0 : index
    %c256 = arith.constant 256 : index
    %5 = vector.load %arg8[%c0_11, %c0_12, %c256] : memref<2x16x640xf32, #tpu.memory_space<vmem>>, vector<2x16x128xf32>
    tpu.vector_store %arg8[%c0_11, %c0_12, %c256], %4 {strides = array<i32>} : memref<2x16x640xf32, #tpu.memory_space<vmem>>, vector<2x16x128xf32>,
    %c0_13 = arith.constant 0 : index
    %c3 = arith.constant 3 : index
    %c0_14 = arith.constant 0 : index
    %6 = vector.load %arg1[%c0_13, %c3, %c0_14] : memref<2x20x128xf32, #tpu.memory_space<vmem>>, vector<2x16x128xf32>
    %c0_15 = arith.constant 0 : index
    %c0_16 = arith.constant 0 : index
    %c384 = arith.constant 384 : index
    %7 = vector.load %arg8[%c0_15, %c0_16, %c384] : memref<2x16x640xf32, #tpu.memory_space<vmem>>, vector<2x16x128xf32>
    tpu.vector_store %arg8[%c0_15, %c0_16, %c384], %6 {strides = array<i32>} : memref<2x16x640xf32, #tpu.memory_space<vmem>>, vector<2x16x128xf32>,
    %c0_17 = arith.constant 0 : index
    %c4 = arith.constant 4 : index
    %c0_18 = arith.constant 0 : index
    %8 = vector.load %arg1[%c0_17, %c4, %c0_18] : memref<2x20x128xf32, #tpu.memory_space<vmem>>, vector<2x16x128xf32>
    %c0_19 = arith.constant 0 : index
    %c0_20 = arith.constant 0 : index
    %c512 = arith.constant 512 : index
    %9 = vector.load %arg8[%c0_19, %c0_20, %c512] : memref<2x16x640xf32, #tpu.memory_space<vmem>>, vector<2x16x128xf32>
    tpu.vector_store %arg8[%c0_19, %c0_20, %c512], %8 {strides = array<i32>} : memref<2x16x640xf32, #tpu.memory_space<vmem>>, vector<2x16x128xf32>,
    %c0_21 = arith.constant 0 : index
    %c0_22 = arith.constant 0 : index
    %c0_23 = arith.constant 0 : index
    %10 = vector.load %arg8[%c0_21, %c0_22, %c0_23] : memref<2x16x640xf32, #tpu.memory_space<vmem>>, vector<2x16x640xf32>
    %11 = vector.shape_cast %10 : vector<2x16x640xf32> to vector<32x640xf32>
    %c0_24 = arith.constant 0 : index
    %c0_25 = arith.constant 0 : index
    %12 = vector.load %arg2[%c0_24, %c0_25] : memref<640x128xf32, #tpu.memory_space<vmem>>, vector<640x128xf32>
    %cst = arith.constant dense<0.000000e+00> : vector<32x128xf32>
    %13 = tpu.matmul %11, %12, %cst {dimension_numbers = #tpu.dot_dimension_numbers<[1], [0], [0], [1], [0, 0, 1, 1], [], []>} : vector<32x640xf32>, vector<640x128xf32>, vector<32x128xf32> -> vector<32x128xf32>
    %c0_26 = arith.constant 0 : index
    %c0_27 = arith.constant 0 : index
    %14 = vector.load %arg5[%c0_26, %c0_27] : memref<4x128xf32, #tpu.memory_space<vmem>>, vector<1x128xf32>
    %15 = vector.shape_cast %14 : vector<1x128xf32> to vector<128xf32>
    %16 = vector.shape_cast %15 : vector<128xf32> to vector<1x128xf32>
    %17 = vector.broadcast %16 : vector<1x128xf32> to vector<32x128xf32>
    %18 = arith.addf %13, %17 : vector<32x128xf32>
    %cst_28 = arith.constant 0.000000e+00 : f32
    %19 = vector.broadcast %cst_28 : f32 to vector<32x128xf32>
    %20 = arith.maximumf %18, %19 : vector<32x128xf32>
    %21 = vector.shape_cast %20 : vector<32x128xf32> to vector<2x16x128xf32>
    %c0_29 = arith.constant 0 : index
    %c0_30 = arith.constant 0 : index
    %22 = vector.load %arg6[%c0_29, %c0_30] : memref<16x128xf32, #tpu.memory_space<vmem>>, vector<16x128xf32>
    %23 = vector.shape_cast %22 : vector<16x128xf32> to vector<1x16x128xf32>
    %24 = vector.broadcast %23 : vector<1x16x128xf32> to vector<2x16x128xf32>
    %25 = arith.mulf %21, %24 : vector<2x16x128xf32>
    %cst_31 = arith.constant dense<0.000000e+00> : vector<2x128xf32>
    %26 = vector.multi_reduction <add>, %25, %cst_31 [1] : vector<2x16x128xf32> to vector<2x128xf32>
    %c0_32 = arith.constant 0 : index
    %c0_33 = arith.constant 0 : index
    %27 = vector.load %arg3[%c0_32, %c0_33] : memref<128x256xf32, #tpu.memory_space<vmem>>, vector<128x256xf32>
    %cst_34 = arith.constant dense<0.000000e+00> : vector<2x256xf32>
    %28 = tpu.matmul %26, %27, %cst_34 {dimension_numbers = #tpu.dot_dimension_numbers<[1], [0], [0], [1], [0, 0, 1, 1], [], []>} : vector<2x128xf32>, vector<128x256xf32>, vector<2x256xf32> -> vector<2x256xf32>
    %29 = vector.extract_strided_slice %28 {offsets = [0, 0], sizes = [2, 128], strides = [1, 1]} : vector<2x256xf32> to vector<2x128xf32>
    %c1_35 = arith.constant 1 : index
    %c0_36 = arith.constant 0 : index
    %30 = vector.load %arg5[%c1_35, %c0_36] : memref<4x128xf32, #tpu.memory_space<vmem>>, vector<1x128xf32>
    %31 = vector.shape_cast %30 : vector<1x128xf32> to vector<128xf32>
    %32 = vector.shape_cast %31 : vector<128xf32> to vector<1x128xf32>
    %33 = vector.broadcast %32 : vector<1x128xf32> to vector<2x128xf32>
    %34 = arith.addf %29, %33 : vector<2x128xf32>
    %35 = arith.negf %34 : vector<2x128xf32>
    %36 = math.exp %35 : vector<2x128xf32>
    %cst_37 = arith.constant 1.000000e+00 : f32
    %37 = vector.broadcast %cst_37 : f32 to vector<2x128xf32>
    %38 = arith.addf %37, %36 : vector<2x128xf32>
    %39 = arith.divf %37, %38 : vector<2x128xf32>
    %40 = vector.extract_strided_slice %28 {offsets = [0, 128], sizes = [2, 128], strides = [1, 1]} : vector<2x256xf32> to vector<2x128xf32>
    %c2_38 = arith.constant 2 : index
    %c0_39 = arith.constant 0 : index
    %41 = vector.load %arg5[%c2_38, %c0_39] : memref<4x128xf32, #tpu.memory_space<vmem>>, vector<1x128xf32>
    %42 = vector.shape_cast %41 : vector<1x128xf32> to vector<128xf32>
    %43 = vector.shape_cast %42 : vector<128xf32> to vector<1x128xf32>
    %44 = vector.broadcast %43 : vector<1x128xf32> to vector<2x128xf32>
    %45 = arith.addf %40, %44 : vector<2x128xf32>
    %cst_40 = arith.constant 0.000000e+00 : f32
    %46 = vector.broadcast %cst_40 : f32 to vector<2x128xf32>
    %47 = arith.maximumf %45, %46 : vector<2x128xf32>
    %48 = arith.mulf %39, %47 : vector<2x128xf32>
    %cst_41 = arith.constant 1.000000e+00 : f32
    %49 = vector.broadcast %cst_41 : f32 to vector<2x128xf32>
    %50 = arith.subf %49, %39 : vector<2x128xf32>
    %51 = arith.mulf %50, %26 : vector<2x128xf32>
    %52 = arith.addf %48, %51 : vector<2x128xf32>
    %c0_42 = arith.constant 0 : index
    %c0_43 = arith.constant 0 : index
    %53 = vector.load %arg4[%c0_42, %c0_43] : memref<128x128xf32, #tpu.memory_space<vmem>>, vector<128x128xf32>
    %cst_44 = arith.constant dense<0.000000e+00> : vector<2x128xf32>
    %54 = tpu.matmul %52, %53, %cst_44 {dimension_numbers = #tpu.dot_dimension_numbers<[1], [0], [0], [1], [0, 0, 1, 1], [], []>} : vector<2x128xf32>, vector<128x128xf32>, vector<2x128xf32> -> vector<2x128xf32>
    %c3_45 = arith.constant 3 : index
    %c0_46 = arith.constant 0 : index
    %55 = vector.load %arg5[%c3_45, %c0_46] : memref<4x128xf32, #tpu.memory_space<vmem>>, vector<1x128xf32>
    %56 = vector.shape_cast %55 : vector<1x128xf32> to vector<128xf32>
    %57 = vector.shape_cast %56 : vector<128xf32> to vector<1x128xf32>
    %58 = vector.broadcast %57 : vector<1x128xf32> to vector<2x128xf32>
    %59 = arith.addf %54, %58 : vector<2x128xf32>
    %cst_47 = arith.constant dense<0xFF800000> : vector<2xf32>
    %60 = vector.multi_reduction <maximumf>, %59, %cst_47 [1] : vector<2x128xf32> to vector<2xf32>
    %61 = vector.shape_cast %60 : vector<2xf32> to vector<2x1xf32>
    %62 = vector.broadcast %61 : vector<2x1xf32> to vector<2x128xf32>
    %63 = arith.subf %59, %62 : vector<2x128xf32>
    %64 = math.exp %63 : vector<2x128xf32>
    %cst_48 = arith.constant dense<0.000000e+00> : vector<2xf32>
    %65 = vector.multi_reduction <add>, %64, %cst_48 [1] : vector<2x128xf32> to vector<2xf32>
    %66 = vector.shape_cast %65 : vector<2xf32> to vector<2x1xf32>
    %67 = math.log %66 : vector<2x1xf32>
    %68 = arith.addf %61, %67 : vector<2x1xf32>
    %69 = vector.broadcast %68 : vector<2x1xf32> to vector<2x128xf32>
    %70 = arith.subf %59, %69 : vector<2x128xf32>
    %c0_49 = arith.constant 0 : index
    %c0_50 = arith.constant 0 : index
    %71 = vector.load %arg7[%c0_49, %c0_50] : memref<2x128xf32, #tpu.memory_space<vmem>>, vector<2x128xf32>
    tpu.vector_store %arg7[%c0_49, %c0_50], %70 {strides = array<i32>} : memref<2x128xf32, #tpu.memory_space<vmem>>, vector<2x128xf32>,
    return
  }
  func.func @transform_0(%arg0: i32) -> (i32, i32, i32) {
    %c0_i32 = arith.constant 0 : i32
    %c0_i32_0 = arith.constant 0 : i32
    %c0_i32_1 = arith.constant 0 : i32
    return %arg0, %c0_i32, %c0_i32_0 : i32, i32, i32
  }
  func.func @transform_1(%arg0: i32) -> (i32, i32) {
    %c0_i32 = arith.constant 0 : i32
    %c0_i32_0 = arith.constant 0 : i32
    %c0_i32_1 = arith.constant 0 : i32
    return %c0_i32, %c0_i32_0 : i32, i32
  }
  func.func @transform_2(%arg0: i32) -> (i32, i32) {
    %c0_i32 = arith.constant 0 : i32
    %c0_i32_0 = arith.constant 0 : i32
    %c0_i32_1 = arith.constant 0 : i32
    return %c0_i32, %c0_i32_0 : i32, i32
  }
  func.func @transform_3(%arg0: i32) -> (i32, i32) {
    %c0_i32 = arith.constant 0 : i32
    %c0_i32_0 = arith.constant 0 : i32
    %c0_i32_1 = arith.constant 0 : i32
    return %c0_i32, %c0_i32_0 : i32, i32
  }
  func.func @transform_4(%arg0: i32) -> (i32, i32) {
    %c0_i32 = arith.constant 0 : i32
    %c0_i32_0 = arith.constant 0 : i32
    %c0_i32_1 = arith.constant 0 : i32
    return %c0_i32, %c0_i32_0 : i32, i32
  }
  func.func @transform_5(%arg0: i32) -> (i32, i32) {
    %c0_i32 = arith.constant 0 : i32
    %c0_i32_0 = arith.constant 0 : i32
    %c0_i32_1 = arith.constant 0 : i32
    return %c0_i32, %c0_i32_0 : i32, i32
  }
  func.func @transform_6(%arg0: i32) -> (i32, i32) {
    %c0_i32 = arith.constant 0 : i32
    %c0_i32_0 = arith.constant 0 : i32
    return %arg0, %c0_i32 : i32, i32
  }
}

</mosaic_0001>

<bundles_post_ra>
// kernel: cnn_classifier_forward.1
= control target key start
LH: loop header
LB: loop body
LE: loop exit
PB: predicated region body
PF: predicated region fallthrough
CT: control target
= control target key end

     0   :  { %11 = vsyncpa [#allocation4], 0  ;;  %s1427_s0 = inlined_call_operand.vmem [shape: f32[2,20,128], index: 0, kind: input, shape index: {}]   ;;  %s1428_s1 = inlined_call_operand.hbm [shape: f32[640,128], index: 1, kind: input, shape index: {}]   ;;  %s1429_s2 = inlined_call_operand.vmem [shape: f32[128,256], index: 2, kind: input, shape index: {}]   ;;  %s1430_s3 = inlined_call_operand.hbm [shape: f32[128,128], index: 3, kind: input, shape index: {}]   ;;  %s1431_s4 = inlined_call_operand.vmem [shape: f32[4,128], index: 4, kind: input, shape index: {}]   ;;  %s1432_s5 = inlined_call_operand.vmem [shape: f32[16,128], index: 5, kind: input, shape index: {}]   ;;  %s1433_s6 = inlined_call_operand.hbm [shape: f32[2,128], index: 6, kind: output, shape index: {}]  }
   0x1   :  { %12 = vsyncpa [#allocation7], 0 }
   0x2   :  { %13 = vsyncpa [#allocation5], 0  ;;  %s1172_s21 = smov [#allocation3]   ;;  %s1100_s25 = scalar_lea.hbm %s1428_s1, 10240 }
   0x3   :  { %s21_s22 = sshll.u32 %s1172_s21, 4  ;;  %p1101_p0 = scmp.ne.s32.totalorder %s1428_s1, %s1100_s25  ;;  %s22_s22 = int_to_ptr.vmem [resolvable:$true] %s21_s22 }
   0x4   :  { %p1104_p1 = scmp.lt.u32.totalorder %s1100_s25, %s1428_s1 }
   0x6   :  { %p1106_p2 = pnand %p1104_p1, %p1101_p0 }
   0x8   :  { %1109 = shalt.err (!%p1106_p2)
}
   0x9   :  { %s1110_s30 = scalar_lea.vmem %s22_s22, 10240  ;;  %p1115_p4 = scmp.lt.s32.totalorder %s22_s22, %s22_s22 }
   0xa   :  { %p1111_p3 = scmp.ne.s32.totalorder %s22_s22, %s1110_s30  ;;  %p1116_p5 = scmp.lt.s32.totalorder %s1110_s30, %s1110_s30 }
   0xc   :  { %p1117_p6 = por %p1116_p5, %p1115_p4 }
   0xe   :  { %p1118_p7 = pnand %p1117_p6, %p1111_p3 }
  0x10   :  { %1121 = shalt.err (!%p1118_p7)
}
  0x11   :  { %s1173_s7 = smov 128   ;;  %s1174_s8 = smov 8  }
  0x12   :  { %27 = dma.hbm_to_vmem [thread:$0]  %s1428_s1, 10240, %s22_s22, [#allocation4], %s1173_s7, %s1173_s7, %s1174_s8  }
  0x13   :  { %s1175_s11 = smov [#allocation6]   ;;  %s1122_s15 = scalar_lea.hbm %s1430_s3, 2048 }
  0x14   :  { %s35_s12 = sshll.u32 %s1175_s11, 4  ;;  %p1123_p8 = scmp.ne.s32.totalorder %s1430_s3, %s1122_s15  ;;  %s36_s12 = int_to_ptr.vmem [resolvable:$true] %s35_s12 }
  0x15   :  { %p1126_p9 = scmp.lt.u32.totalorder %s1122_s15, %s1430_s3 }
  0x17   :  { %p1128_p10 = pnand %p1126_p9, %p1123_p8 }
  0x19   :  { %1131 = shalt.err (!%p1128_p10)
}
  0x1a   :  { %s1132_s20 = scalar_lea.vmem %s36_s12, 2048  ;;  %p1137_p12 = scmp.lt.s32.totalorder %s36_s12, %s36_s12 }
  0x1b   :  { %p1133_p11 = scmp.ne.s32.totalorder %s36_s12, %s1132_s20  ;;  %p1138_p13 = scmp.lt.s32.totalorder %s1132_s20, %s1132_s20 }
  0x1d   :  { %p1139_p0 = por %p1138_p13, %p1137_p12 }
  0x1f   :  { %p1140_p1 = pnand %p1139_p0, %p1133_p11 }
  0x21   :  { %1143 = shalt.err (!%p1140_p1)
}
  0x22   :  { %41 = dma.hbm_to_vmem [thread:$0]  %s1430_s3, 2048, %s36_s12, [#allocation7], %s1173_s7, %s1173_s7, %s1174_s8  }
  0x23   :  { %1166 = dma.done.wait [#allocation4], 10240  }
  0x24   :  { %1167 = vsyncadd [#allocation4], 4294957056 }
  0x25   :  { %1168 = dma.done.wait [#allocation7], 2048  }
  0x26   :  { %1169 = vsyncadd [#allocation7], 4294965248  ;;  %v128_v0 = vld [vmem:[#allocation3 + $0x80] sm:$0xff]  ;;  %v129_v1 = vld [vmem:[#allocation3 + $0x88] sm:$0xff]  ;;  %vm510_vm0 = vcmask 1041409   ;;  %vm1178_vm1 = vmmov 0  }
  0x27   :  { %v112_v2 = vld [vmem:[#allocation3] sm:$0xff]  ;;  %v932_v3 = vpack.c.bf16 %v129_v1, %v128_v0  ;;  %v113_v4 = vld [vmem:[#allocation3 + $0x8] sm:$0xff]  ;;  %v130_v11 = vld [vmem:[#allocation3 + $0x90] sm:$0xff]  ;;  %vm698_vm2 = vcmask 1041408   ;;  %s1179_s28 = smov [#allocation8]  }
  0x28   :  { %v160_v5 = vld [vmem:[#allocation3 + $0x180] sm:$0xff]  ;;  %v161_v6 = vld [vmem:[#allocation3 + $0x188] sm:$0xff]  ;;  %v934_v7 = vpack.c.bf16 %v113_v4, %v112_v2  ;;  %v131_v13 = vld [vmem:[#allocation3 + $0x98] sm:$0xff]  ;;  %s719_s29 = sshll.u32 %s1179_s28, 4  ;;  %s720_s29 = int_to_ptr.vmem [resolvable:$true] %s719_s29 }
  0x29   :  { %v964_v8 = vpack.c.bf16 %v161_v6, %v160_v5  ;;  %v144_v9 = vld [vmem:[#allocation3 + $0x100] sm:$0xff]  ;;  %v145_v10 = vld [vmem:[#allocation3 + $0x108] sm:$0xff]  ;;  %933 = vmatprep.subr.bf16.mxu0 %v932_v3  ;;  %v114_v14 = vld [vmem:[#allocation3 + $0x10] sm:$0xff]  ;;  %v936_v16 = vpack.c.bf16 %v131_v13, %v130_v11  ;;  %p1149_p3 = scmp.lt.s32.totalorder %s720_s29, %s720_s29 }
  0x2a   :  { %v966_v12 = vpack.c.bf16 %v145_v10, %v144_v9  ;;  %v115_v15 = vld [vmem:[#allocation3 + $0x18] sm:$0xff]  ;;  %935 = vmatpush3.bf16.msra.mxu0 %v934_v7  ;;  %v162_v18 = vld [vmem:[#allocation3 + $0x190] sm:$0xff]  ;;  %v132_v23 = vld [vmem:[#allocation3 + $0xa0] sm:$0xff] }
  0x2b   :  { %965 = vmatprep.subr.bf16.mxu1 %v964_v8  ;;  %v938_v17 = vpack.c.bf16 %v115_v15, %v114_v14  ;;  %v163_v19 = vld [vmem:[#allocation3 + $0x198] sm:$0xff]  ;;  %v146_v20 = vld [vmem:[#allocation3 + $0x110] sm:$0xff]  ;;  %v133_v24 = vld [vmem:[#allocation3 + $0xa8] sm:$0xff]  ;;  %937 = vmatprep.subr.bf16.mxu0 %v936_v16 }
  0x2c   :  { %967 = vmatpush3.bf16.msra.mxu1 %v966_v12  ;;  %v968_v21 = vpack.c.bf16 %v163_v19, %v162_v18  ;;  %v147_v22 = vld [vmem:[#allocation3 + $0x118] sm:$0xff]  ;;  %v940_v26 = vpack.c.bf16 %v133_v24, %v132_v23  ;;  %v116_v27 = vld [vmem:[#allocation3 + $0x20] sm:$0xff]  ;;  %v117_v28 = vld [vmem:[#allocation3 + $0x28] sm:$0xff] }
  0x2d   :  { %v970_v25 = vpack.c.bf16 %v147_v22, %v146_v20  ;;  %v164_v29 = vld [vmem:[#allocation3 + $0x1a0] sm:$0xff]  ;;  %v165_v30 = vld [vmem:[#allocation3 + $0x1a8] sm:$0xff]  ;;  %v942_v33 = vpack.c.bf16 %v117_v28, %v116_v27  ;;  %v134_v35 = vld [vmem:[#allocation3 + $0xb0] sm:$0xff] }
  0x2e   :  { %969 = vmatprep.subr.bf16.mxu1 %v968_v21  ;;  %v148_v31 = vld [vmem:[#allocation3 + $0x120] sm:$0xff]  ;;  %v149_v32 = vld [vmem:[#allocation3 + $0x128] sm:$0xff]  ;;  %939 = vmatpush3.bf16.msra.mxu0 %v938_v17  ;;  %v972_v34 = vpack.c.bf16 %v165_v30, %v164_v29  ;;  %v135_v36 = vld [vmem:[#allocation3 + $0xb8] sm:$0xff] }
  0x2f   :  { %v118_v37 = vld [vmem:[#allocation3 + $0x30] sm:$0xff]  ;;  %941 = vmatprep.subr.bf16.mxu0 %v940_v26  ;;  %v974_v38 = vpack.c.bf16 %v149_v32, %v148_v31  ;;  %v944_v39 = vpack.c.bf16 %v135_v36, %v134_v35  ;;  %v119_v40 = vld [vmem:[#allocation3 + $0x38] sm:$0xff]  ;;  %v136_v46 = vld [vmem:[#allocation3 + $0xc0] sm:$0xff] }
  0x30   :  { %971 = vmatpush3.bf16.msra.mxu1 %v970_v25  ;;  %v166_v41 = vld [vmem:[#allocation3 + $0x1b0] sm:$0xff]  ;;  %v167_v42 = vld [vmem:[#allocation3 + $0x1b8] sm:$0xff]  ;;  %v137_v47 = vld [vmem:[#allocation3 + $0xc8] sm:$0xff]  ;;  %v946_v48 = vpack.c.bf16 %v119_v40, %v118_v37 }
  0x31   :  { %973 = vmatprep.subr.bf16.mxu1 %v972_v34  ;;  %v976_v43 = vpack.c.bf16 %v167_v42, %v166_v41  ;;  %v150_v44 = vld [vmem:[#allocation3 + $0x130] sm:$0xff]  ;;  %v151_v45 = vld [vmem:[#allocation3 + $0x138] sm:$0xff]  ;;  %v168_v49 = vld [vmem:[#allocation3 + $0x1c0] sm:$0xff]  ;;  %v948_v52 = vpack.c.bf16 %v137_v47, %v136_v46 }
  0x32   :  { %943 = vmatpush3.bf16.msra.mxu0 %v942_v33  ;;  %v169_v50 = vld [vmem:[#allocation3 + $0x1c8] sm:$0xff]  ;;  %v978_v51 = vpack.c.bf16 %v151_v45, %v150_v44  ;;  %v120_v53 = vld [vmem:[#allocation3 + $0x40] sm:$0xff]  ;;  %v138_v58 = vld [vmem:[#allocation3 + $0xd0] sm:$0xff] }
  0x33   :  { %945 = vmatprep.subr.bf16.mxu0 %v944_v39  ;;  %v121_v54 = vld [vmem:[#allocation3 + $0x48] sm:$0xff]  ;;  %v152_v55 = vld [vmem:[#allocation3 + $0x140] sm:$0xff]  ;;  %v980_v56 = vpack.c.bf16 %v169_v50, %v168_v49  ;;  %v139_v59 = vld [vmem:[#allocation3 + $0xd8] sm:$0xff] }
  0x34   :  { %975 = vmatpush3.bf16.msra.mxu1 %v974_v38  ;;  %v153_v57 = vld [vmem:[#allocation3 + $0x148] sm:$0xff]  ;;  %v170_v60 = vld [vmem:[#allocation3 + $0x1d0] sm:$0xff]  ;;  %v171_v61 = vld [vmem:[#allocation3 + $0x1d8] sm:$0xff]  ;;  %v950_v62 = vpack.c.bf16 %v121_v54, %v120_v53  ;;  %v952_v0 = vpack.c.bf16 %v139_v59, %v138_v58 }
  0x35   :  { %977 = vmatprep.subr.bf16.mxu1 %v976_v43  ;;  %v982_v63 = vpack.c.bf16 %v153_v57, %v152_v55  ;;  %v122_v1 = vld [vmem:[#allocation3 + $0x50] sm:$0xff]  ;;  %v123_v2 = vld [vmem:[#allocation3 + $0x58] sm:$0xff]  ;;  %v984_v4 = vpack.c.bf16 %v171_v61, %v170_v60  ;;  %v140_v6 = vld [vmem:[#allocation3 + $0xe0] sm:$0xff] }
  0x36   :  { %947 = vmatpush3.bf16.msra.mxu0 %v946_v48  ;;  %v154_v3 = vld [vmem:[#allocation3 + $0x150] sm:$0xff]  ;;  %v155_v5 = vld [vmem:[#allocation3 + $0x158] sm:$0xff]  ;;  %v141_v7 = vld [vmem:[#allocation3 + $0xe8] sm:$0xff]  ;;  %v954_v10 = vpack.c.bf16 %v123_v2, %v122_v1 }
  0x37   :  { %949 = vmatprep.subr.bf16.mxu0 %v948_v52  ;;  %v172_v8 = vld [vmem:[#allocation3 + $0x1e0] sm:$0xff]  ;;  %v173_v9 = vld [vmem:[#allocation3 + $0x1e8] sm:$0xff]  ;;  %v986_v13 = vpack.c.bf16 %v155_v5, %v154_v3  ;;  %v956_v14 = vpack.c.bf16 %v141_v7, %v140_v6  ;;  %v142_v19 = vld [vmem:[#allocation3 + $0xf0] sm:$0xff] }
  0x38   :  { %979 = vmatpush3.bf16.msra.mxu1 %v978_v51  ;;  %v124_v11 = vld [vmem:[#allocation3 + $0x60] sm:$0xff]  ;;  %v125_v15 = vld [vmem:[#allocation3 + $0x68] sm:$0xff]  ;;  %v988_v18 = vpack.c.bf16 %v173_v9, %v172_v8  ;;  %v143_v20 = vld [vmem:[#allocation3 + $0xf8] sm:$0xff] }
  0x39   :  { %981 = vmatprep.subr.bf16.mxu1 %v980_v56  ;;  %v60_v12 = vld [vmem:[%s1427_s0 + $0x1] sm:$0xff]  ;;  %v174_v22 = vld [vmem:[#allocation3 + $0x1f0] sm:$0xff]  ;;  %v175_v23 = vld [vmem:[#allocation3 + $0x1f8] sm:$0xff]  ;;  %v958_v24 = vpack.c.bf16 %v125_v15, %v124_v11  ;;  %v960_v26 = vpack.c.bf16 %v143_v20, %v142_v19 }
  0x3a   :  { %951 = vmatpush3.bf16.msra.mxu0 %v950_v62  ;;  %v156_v16 = vld [vmem:[#allocation3 + $0x160] sm:$0xff]  ;;  %v157_v17 = vld [vmem:[#allocation3 + $0x168] sm:$0xff]  ;;  %261 = vmatprep.mubr.f32.mxu0 %v60_v12  ;;  %v126_v27 = vld [vmem:[#allocation3 + $0x70] sm:$0xff]  ;;  %v992_v30 = vpack.c.bf16 %v175_v23, %v174_v22 }
  0x3b   :  { %953 = vmatprep.subr.bf16.mxu0 %v952_v0  ;;  %v76_v21 = vld [vmem:[%s1427_s0 + $0x3] sm:$0xff]  ;;  %v990_v25 = vpack.c.bf16 %v157_v17, %v156_v16  ;;  %v127_v28 = vld [vmem:[#allocation3 + $0x78] sm:$0xff]  ;;  %v158_v29 = vld [vmem:[#allocation3 + $0x170] sm:$0xff] }
  0x3c   :  { %983 = vmatpush3.bf16.msra.mxu1 %v982_v63  ;;  %346 = vmatprep.mubr.f32.mxu1 %v76_v21  ;;  %v159_v31 = vld [vmem:[#allocation3 + $0x178] sm:$0xff]  ;;  %v176_v32 = vld [vmem:[#allocation3 + $0x200] sm:$0xff]  ;;  %v177_v33 = vld [vmem:[#allocation3 + $0x208] sm:$0xff]  ;;  %v962_v34 = vpack.c.bf16 %v127_v28, %v126_v27 }
  0x3d   :  { %985 = vmatprep.subr.bf16.mxu1 %v984_v4  ;;  %v994_v35 = vpack.c.bf16 %v159_v31, %v158_v29  ;;  %v996_v36 = vpack.c.bf16 %v177_v33, %v176_v32  ;;  %v178_v37 = vld [vmem:[#allocation3 + $0x210] sm:$0xff]  ;;  %v179_v38 = vld [vmem:[#allocation3 + $0x218] sm:$0xff]  ;;  %v52_v39 = vld [vmem:[%s1427_s0] sm:$0xff] }
  0x3e   :  { %955 = vmatpush3.bf16.msra.mxu0 %v954_v10  ;;  %v68_v40 = vld [vmem:[%s1427_s0 + $0x2] sm:$0xff]  ;;  %v1000_v41 = vpack.c.bf16 %v179_v38, %v178_v37  ;;  %v77_v45 = vld [vmem:[%s1427_s0 + $0xb] sm:$0xff]  ;;  %v183_v50 = vld [vmem:[#allocation3 + $0x238] sm:$0xff] }
  0x3f   :  { %957 = vmatprep.subr.bf16.mxu0 %v956_v14  ;;  %v180_v42 = vld [vmem:[#allocation3 + $0x220] sm:$0xff]  ;;  %v181_v43 = vld [vmem:[#allocation3 + $0x228] sm:$0xff]  ;;  %v182_v49 = vld [vmem:[#allocation3 + $0x230] sm:$0xff] }
  0x40   :  { %987 = vmatpush3.bf16.msra.mxu1 %v986_v13  ;;  %v61_v44 = vld [vmem:[%s1427_s0 + $0x9] sm:$0xff]  ;;  %v1004_v47 = vpack.c.bf16 %v181_v43, %v180_v42  ;;  %v62_v51 = vld [vmem:[%s1427_s0 + $0x19] sm:$0xff]  ;;  %v1008_v54 = vpack.c.bf16 %v183_v50, %v182_v49  ;;  %v63_v58 = vld [vmem:[%s1427_s0 + $0x21] sm:$0xff] }
  0x41   :  { %989 = vmatprep.subr.bf16.mxu1 %v988_v18  ;;  %v53_v46 = vld [vmem:[%s1427_s0 + $0x8] sm:$0xff]  ;;  %v78_v52 = vld [vmem:[%s1427_s0 + $0x1b] sm:$0xff]  ;;  %v186_v63 = vld [vmem:[#allocation3 + $0x250] sm:$0xff] }
  0x42   :  { %959 = vmatpush3.bf16.msra.mxu0 %v958_v24  ;;  %v69_v48 = vld [vmem:[%s1427_s0 + $0xa] sm:$0xff]  ;;  %v54_v53 = vld [vmem:[%s1427_s0 + $0x18] sm:$0xff]  ;;  %v184_v56 = vld [vmem:[#allocation3 + $0x240] sm:$0xff] }
  0x43   :  { %961 = vmatprep.subr.bf16.mxu0 %v960_v26  ;;  %v70_v55 = vld [vmem:[%s1427_s0 + $0x1a] sm:$0xff]  ;;  %v185_v57 = vld [vmem:[#allocation3 + $0x248] sm:$0xff]  ;;  %v190_v6 = vld [vmem:[#allocation3 + $0x270] sm:$0xff] }
  0x44   :  { %991 = vmatpush3.bf16.msra.mxu1 %v990_v25  ;;  %v79_v59 = vld [vmem:[%s1427_s0 + $0x23] sm:$0xff]  ;;  %v1012_v61 = vpack.c.bf16 %v185_v57, %v184_v56  ;;  %v187_v0 = vld [vmem:[#allocation3 + $0x258] sm:$0xff]  ;;  %v85_v9 = vld [vmem:[%s1427_s0 + $0xc] sm:$0xff] }
  0x45   :  { %993 = vmatprep.subr.bf16.mxu1 %v992_v30  ;;  %v55_v60 = vld [vmem:[%s1427_s0 + $0x20] sm:$0xff]  ;;  %v1016_v2 = vpack.c.bf16 %v187_v0, %v186_v63  ;;  %v189_v4 = vld [vmem:[#allocation3 + $0x268] sm:$0xff]  ;;  %v191_v7 = vld [vmem:[#allocation3 + $0x278] sm:$0xff] }
  0x46   :  { %963 = vmatpush3.bf16.msra.mxu0 %v962_v34  ;;  %v71_v62 = vld [vmem:[%s1427_s0 + $0x22] sm:$0xff]  ;;  %v1024_v8 = vpack.c.bf16 %v191_v7, %v190_v6  ;;  %v479_v13 = vld [vmem:[%s1429_s2 + $0x18] sm:$0xff]  ;;  %v478_v16 = vld [vmem:[%s1429_s2 + $0x10] sm:$0xff] }
  0x47   :  { %997 = vmatprep.subr.bf16.mxu0 %v996_v36  ;;  %v84_v1 = vld [vmem:[%s1427_s0 + $0x4] sm:$0xff]  ;;  %v86_v10 = vld [vmem:[%s1427_s0 + $0x1c] sm:$0xff]  ;;  %v482_v22 = vld [vmem:[%s1429_s2 + $0x30] sm:$0xff] }
  0x48   :  { %995 = vmatpush3.bf16.msra.mxu1 %v994_v35  ;;  %v188_v3 = vld [vmem:[#allocation3 + $0x260] sm:$0xff]  ;;  %v477_v12 = vld [vmem:[%s1429_s2 + $0x8] sm:$0xff]  ;;  %v483_v19 = vld [vmem:[%s1429_s2 + $0x38] sm:$0xff] }
  0x49   :  { %262 = vmatmul.mubr.f32.vlgmr.msra.gmra.mrb[0].mxu0 %v52_v39  ;;  %v1020_v5 = vpack.c.bf16 %v189_v4, %v188_v3  ;;  %v87_v11 = vld [vmem:[%s1427_s0 + $0x24] sm:$0xff]  ;;  %v1028_v14 = vpack.c.bf16 %v479_v13, %v477_v12  ;;  %v487_v25 = vld [vmem:[%s1429_s2 + $0x58] sm:$0xff]  ;;  %v486_v28 = vld [vmem:[%s1429_s2 + $0x50] sm:$0xff] }
  0x4a   :  { %999 = vmatpush3.bf16.msra.mxu0 %v996_v36  ;;  %266 = vmatprep.mubr.f32.mxu0 %v61_v44  ;;  %v476_v15 = vld [vmem:[%s1429_s2] sm:$0xff]  ;;  %v481_v17 = vld [vmem:[%s1429_s2 + $0x28] sm:$0xff]  ;;  %v491_v31 = vld [vmem:[%s1429_s2 + $0x78] sm:$0xff] }
  0x4b   :  { %347 = vmatmul.mubr.f32.vlgmr.msra.gmra.mrb[0].mxu1 %v68_v40  ;;  %1001 = vmatprep.subr.bf16.mxu0 %v1000_v41  ;;  %v1030_v18 = vpack.c.bf16 %v478_v16, %v476_v15  ;;  %v1032_v20 = vpack.c.bf16 %v483_v19, %v481_v17  ;;  %v480_v21 = vld [vmem:[%s1429_s2 + $0x20] sm:$0xff]  ;;  %v485_v24 = vld [vmem:[%s1429_s2 + $0x48] sm:$0xff]  ;;  %v490_v34 = vld [vmem:[%s1429_s2 + $0x70] sm:$0xff] }
  0x4c   :  { %351 = vmatprep.mubr.f32.mxu1 %v77_v45  ;;  %1029 = vmatprep.subr.bf16.mxu1 %v1028_v14  ;;  %v1034_v23 = vpack.c.bf16 %v482_v22, %v480_v21  ;;  %v1036_v26 = vpack.c.bf16 %v487_v25, %v485_v24  ;;  %v484_v27 = vld [vmem:[%s1429_s2 + $0x40] sm:$0xff]  ;;  %v489_v30 = vld [vmem:[%s1429_s2 + $0x68] sm:$0xff]  ;;  %v495_v37 = vld [vmem:[%s1429_s2 + $0x98] sm:$0xff] }
  0x4d   :  { %267 = vmatmul.mubr.f32.gmra.mrb[2].mxu0 %v53_v46  ;;  %1031 = vmatpush1.bf16.msra.mxu1 %v1030_v18  ;;  %v1038_v29 = vpack.c.bf16 %v486_v28, %v484_v27  ;;  %v1040_v32 = vpack.c.bf16 %v491_v31, %v489_v30  ;;  %v488_v33 = vld [vmem:[%s1429_s2 + $0x60] sm:$0xff]  ;;  %v493_v36 = vld [vmem:[%s1429_s2 + $0x88] sm:$0xff]  ;;  %v494_v40 = vld [vmem:[%s1429_s2 + $0x90] sm:$0xff] }
  0x4e   :  { %1003 = vmatpush3.bf16.msra.mxu0 %v1000_v41  ;;  %271 = vmatprep.mubr.f32.mxu0 %v62_v51  ;;  %v1042_v35 = vpack.c.bf16 %v490_v34, %v488_v33  ;;  %v1044_v38 = vpack.c.bf16 %v495_v37, %v493_v36  ;;  %v492_v39 = vld [vmem:[%s1429_s2 + $0x80] sm:$0xff]  ;;  %v497_v42 = vld [vmem:[%s1429_s2 + $0xa8] sm:$0xff]  ;;  %v499_v43 = vld [vmem:[%s1429_s2 + $0xb8] sm:$0xff] }
  0x4f   :  { %352 = vmatmul.mubr.f32.gmra.mrb[2].mxu1 %v69_v48  ;;  %1005 = vmatprep.subr.bf16.mxu0 %v1004_v47  ;;  %v1046_v41 = vpack.c.bf16 %v494_v40, %v492_v39  ;;  %v1048_v44 = vpack.c.bf16 %v499_v43, %v497_v42  ;;  %v496_v45 = vld [vmem:[%s1429_s2 + $0xa0] sm:$0xff]  ;;  %v498_v46 = vld [vmem:[%s1429_s2 + $0xb0] sm:$0xff]  ;;  %v501_v48 = vld [vmem:[%s1429_s2 + $0xc8] sm:$0xff] }
  0x50   :  { %356 = vmatprep.mubr.f32.mxu1 %v78_v52  ;;  %1033 = vmatprep.subr.bf16.mxu1 %v1032_v20  ;;  %v503_v49 = vld [vmem:[%s1429_s2 + $0xd8] sm:$0xff]  ;;  %v500_v51 = vld [vmem:[%s1429_s2 + $0xc0] sm:$0xff]  ;;  %v502_v52 = vld [vmem:[%s1429_s2 + $0xd0] sm:$0xff] }
  0x51   :  { %272 = vmatmul.mubr.f32.gmra.mrb[4].mxu0 %v54_v53  ;;  %1035 = vmatpush1.bf16.msra.mxu1 %v1034_v23  ;;  %v1052_v50 = vpack.c.bf16 %v503_v49, %v501_v48  ;;  %v1054_v53 = vpack.c.bf16 %v502_v52, %v500_v51  ;;  %v504_v57 = vld [vmem:[%s1429_s2 + $0xe0] sm:$0xff]  ;;  %v457_v33 = vld [vmem:[%s1432_s5 + $0x8] sm:$0xff] }
  0x52   :  { %1007 = vmatpush3.bf16.msra.mxu0 %v1004_v47  ;;  %276 = vmatprep.mubr.f32.mxu0 %v63_v58  ;;  %v1050_v47 = vpack.c.bf16 %v498_v46, %v496_v45  ;;  %v506_v58 = vld [vmem:[%s1429_s2 + $0xf0] sm:$0xff]  ;;  %v456_v36 = vld [vmem:[%s1432_s5] sm:$0xff] }
  0x53   :  { %357 = vmatmul.mubr.f32.gmra.mrb[4].mxu1 %v70_v55  ;;  %1009 = vmatprep.subr.bf16.mxu0 %v1008_v54  ;;  %v507_v55 = vld [vmem:[%s1429_s2 + $0xf8] sm:$0xff] }
  0x54   :  { %361 = vmatprep.mubr.f32.mxu1 %v79_v59  ;;  %1037 = vmatprep.subr.bf16.mxu1 %v1036_v26  ;;  %v1058_v59 = vpack.c.bf16 %v506_v58, %v504_v57 }
  0x55   :  { %277 = vmatmul.mubr.f32.gmra.mrb[6].mxu0 %v55_v60  ;;  %1039 = vmatpush1.bf16.msra.mxu1 %v1038_v29  ;;  %v1176_v60 = vmov 0.0  }
  0x56   :  { %1011 = vmatpush3.bf16.msra.mxu0 %v1008_v54  ;;  %891 = vmatprep.mubr.f32.mxu0 %v84_v1  ;;  %v505_v54 = vld [vmem:[%s1429_s2 + $0xe8] sm:$0xff] }
  0x57   :  { %362 = vmatmul.mubr.f32.gmra.mrb[6].mxu1 %v71_v62  ;;  %1013 = vmatprep.subr.bf16.mxu0 %v1012_v61  ;;  %v1056_v56 = vpack.c.bf16 %v507_v55, %v505_v54  ;;  %v729_v62 = vld [vmem:[%s1431_s4] ss:$0 sm:$0xff] }
  0x58   :  { %1041 = vmatprep.subr.bf16.mxu1 %v1040_v32  ;;  %577 = vmatprep.mubr.f32.mxu1 %v1176_v60 }
  0x59   :  { %1043 = vmatpush1.bf16.msra.mxu1 %v1042_v35 }
  0x5a   :  { %1015 = vmatpush3.bf16.msra.mxu0 %v1012_v61  ;;  %1045 = vmatprep.subr.bf16.mxu1 %v1044_v38 }
  0x5b   :  { %1017 = vmatprep.subr.bf16.mxu0 %v1016_v2 }
  0x5d   :  { %1047 = vmatpush1.bf16.msra.mxu1 %v1046_v41 }
  0x5e   :  { %1019 = vmatpush3.bf16.msra.mxu0 %v1016_v2  ;;  %1049 = vmatprep.subr.bf16.mxu1 %v1048_v44 }
  0x5f   :  { %1021 = vmatprep.subr.bf16.mxu0 %v1020_v5 }
  0x61   :  { %1051 = vmatpush1.bf16.msra.mxu1 %v1050_v47 }
  0x62   :  { %1023 = vmatpush3.bf16.msra.mxu0 %v1020_v5  ;;  %1053 = vmatprep.subr.bf16.mxu1 %v1052_v50 }
  0x63   :  { %1025 = vmatprep.subr.bf16.mxu0 %v1024_v8 }
  0x65   :  { %1055 = vmatpush1.bf16.msra.mxu1 %v1054_v53 }
  0x66   :  { %1027 = vmatpush3.bf16.msra.mxu0 %v1024_v8  ;;  %1057 = vmatprep.subr.bf16.mxu1 %v1056_v56 }
  0x69   :  { %892 = vmatmul.mubr.f32.vlgmr.msra.gmra.mrb[8].mxu0 %v85_v9  ;;  %1059 = vmatpush1.bf16.msra.mxu1 %v1058_v59 }
  0x6a   :  { %894 = vmatprep.mubr.f32.mxu0 %v86_v10 }
  0x6d   :  { %895 = vmatmul.mubr.f32.gmra.mrb[10].mxu0 %v87_v11 }
  0x6e   :  { %929 = vmatprep.mubr.msk.f32.mxu0 %vm1178_vm1, %v1176_v60 }
 0x11c   :  { %v766_v61 = vpop.f32.mrb[0].mxu0 }
 0x11d   :  { %v767_v63 = vpop.f32.mrb[1].mxu0 }
 0x11e   :  { %v810_v0 = vpop.f32.mrb[0].mxu1  ;;  %v768_v1 = vadd.f32 %v767_v63, %v766_v61 }
 0x11f   :  { %v811_v2 = vpop.f32.mrb[1].mxu1 }
 0x120   :  { %v812_v3 = vadd.f32 %v811_v2, %v810_v0  ;;  %v264_v4 = vadd.f32 %v768_v1, %v729_v62  ;;  %v769_v5 = vpop.f32.mrb[2].mxu0  ;;  %v607_v0 = vld [vmem:[#allocation6] sm:$0xff]  ;;  %v608_v1 = vld [vmem:[#allocation6 + $0x8] sm:$0xff] }
 0x121   :  { %v770_v6 = vpop.f32.mrb[3].mxu0  ;;  %v1061_v2 = vpack.c.bf16 %v608_v1, %v607_v0 }
 0x122   :  { %v813_v7 = vpop.f32.mrb[2].mxu1  ;;  %v771_v8 = vadd.f32 %v770_v6, %v769_v5  ;;  %v349_v10 = vadd.f32 %v812_v3, %v264_v4  ;;  %v1177_v3 = vmov 0.0|0.0   ;;  %v609_v4 = vld [vmem:[#allocation6 + $0x10] sm:$0xff]  ;;  %v610_v5 = vld [vmem:[#allocation6 + $0x18] sm:$0xff] }
 0x123   :  { %v814_v9 = vpop.f32.mrb[3].mxu1  ;;  %1060 = vmatprep.subr.bf16.mxu0 %v1177_v3  ;;  %v1064_v6 = vpack.c.bf16 %v610_v5, %v609_v4 }
 0x124   :  { %v815_v11 = vadd.f32 %v814_v9, %v813_v7  ;;  %v269_v12 = vadd.f32 %v771_v8, %v729_v62  ;;  %v772_v13 = vpop.f32.mrb[4].mxu0  ;;  %1062 = vmatpush3.bf16.msra.mxu0 %v1061_v2  ;;  %v611_v7 = vld [vmem:[#allocation6 + $0x20] sm:$0xff]  ;;  %v612_v8 = vld [vmem:[#allocation6 + $0x28] sm:$0xff] }
 0x125   :  { %v773_v14 = vpop.f32.mrb[5].mxu0  ;;  %1063 = vmatprep.subr.bf16.mxu0 %v1177_v3  ;;  %v1067_v9 = vpack.c.bf16 %v612_v8, %v611_v7 }
 0x126   :  { %v816_v15 = vpop.f32.mrb[4].mxu1  ;;  %v774_v16 = vadd.f32 %v773_v14, %v772_v13  ;;  %v354_v18 = vadd.f32 %v815_v11, %v269_v12  ;;  %v614_v11 = vld [vmem:[#allocation6 + $0x38] sm:$0xff]  ;;  %v615_v13 = vld [vmem:[#allocation6 + $0x40] sm:$0xff]  ;;  %v616_v14 = vld [vmem:[#allocation6 + $0x48] sm:$0xff] }
 0x127   :  { %v817_v17 = vpop.f32.mrb[5].mxu1 }
 0x128   :  { %v818_v19 = vadd.f32 %v817_v17, %v816_v15  ;;  %v274_v20 = vadd.f32 %v774_v16, %v729_v62  ;;  %v775_v21 = vpop.f32.mrb[6].mxu0  ;;  %1065 = vmatpush3.bf16.msra.mxu0 %v1064_v6  ;;  %v1073_v15 = vpack.c.bf16 %v616_v14, %v615_v13  ;;  %v617_v16 = vld [vmem:[#allocation6 + $0x50] sm:$0xff]  ;;  %v618_v17 = vld [vmem:[#allocation6 + $0x58] sm:$0xff] }
 0x129   :  { %v776_v22 = vpop.f32.mrb[7].mxu0  ;;  %1066 = vmatprep.subr.bf16.mxu0 %v1177_v3 }
 0x12a   :  { %v819_v23 = vpop.f32.mrb[6].mxu1  ;;  %v777_v24 = vadd.f32 %v776_v22, %v775_v21  ;;  %v359_v26 = vadd.f32 %v818_v19, %v274_v20  ;;  %v619_v19 = vld [vmem:[#allocation6 + $0x60] sm:$0xff]  ;;  %v620_v20 = vld [vmem:[#allocation6 + $0x68] sm:$0xff]  ;;  %v621_v22 = vld [vmem:[#allocation6 + $0x70] sm:$0xff] }
 0x12b   :  { %v820_v25 = vpop.f32.mrb[7].mxu1  ;;  %v1079_v21 = vpack.c.bf16 %v620_v20, %v619_v19 }
 0x12c   :  { %v821_v27 = vadd.f32 %v820_v25, %v819_v23  ;;  %v279_v28 = vadd.f32 %v777_v24, %v729_v62  ;;  %1068 = vmatpush3.bf16.msra.mxu0 %v1067_v9  ;;  %v622_v23 = vld [vmem:[#allocation6 + $0x78] sm:$0xff]  ;;  %v730_v25 = vld [vmem:[%s1431_s4 + $0x1] ss:$0 sm:$0xff] }
 0x12d   :  { %1069 = vmatprep.subr.bf16.mxu0 %v1177_v3  ;;  %v1082_v24 = vpack.c.bf16 %v622_v23, %v621_v22 }
 0x12e   :  { %v364_v29 = vadd.f32 %v821_v27, %v279_v28 }
 0x13c   :  { %v893_v30 = vpop.f32.mrb[8].mxu0 }
 0x13d   :  { %v439_v31 = vadd.f32 %v893_v30, %v354_v18  ;;  %v433_v32 = vpop.f32.mrb[9].mxu0  ;;  %v1076_v18 = vpack.c.bf16 %v618_v17, %v617_v16 }
 0x13e   :  { %v434_v34 = vadd.f32 %v433_v32, %v349_v10  ;;  %v613_v10 = vld [vmem:[#allocation6 + $0x30] sm:$0xff]  ;;  %v732_v32 = vld [vmem:[%s1431_s4 + $0x2] ss:$0 sm:$0xff] }
 0x13f   :  { %v453_v35 = vmax.f32 %v439_v31, 0.0  ;;  %v1070_v12 = vpack.c.bf16 %v614_v11, %v613_v10 }
 0x140   :  { %v452_v37 = vmax.f32 %v434_v34, 0.0  ;;  %v896_v38 = vpop.f32.mrb[10].mxu0 }
 0x141   :  { %v459_v39 = vmul.f32 %v457_v33, %v453_v35  ;;  %v449_v40 = vadd.f32 %v896_v38, %v364_v29  ;;  %v443_v41 = vpop.f32.mrb[11].mxu0  ;;  %1071 = vmatpush3.bf16.msra.mxu0 %v1070_v12 }
 0x142   :  { %v458_v42 = vmul.f32 %v456_v36, %v452_v37  ;;  %v444_v43 = vadd.f32 %v443_v41, %v359_v26  ;;  %1072 = vmatprep.subr.bf16.mxu0 %v1177_v3 }
 0x143   :  { %v455_v44 = vmax.f32 %v449_v40, 0.0 }
 0x144   :  { %v462_v45 = vadd.f32 %v459_v39, %v458_v42  ;;  %v454_v46 = vmax.f32 %v444_v43, 0.0  ;;  %v733_v39 = vld [vmem:[%s1431_s4 + $0x3] ss:$0 sm:$0xff]  ;;  %s1144_s4 = scalar_lea.vmem %s720_s29, 32 }
 0x145   :  { %v461_v47 = vmul.f32 %v457_v33, %v455_v44  ;;  %1074 = vmatpush3.bf16.msra.mxu0 %v1073_v15  ;;  %p1145_p2 = scmp.ne.s32.totalorder %s720_s29, %s1144_s4  ;;  %p1150_p4 = scmp.lt.s32.totalorder %s1144_s4, %s1144_s4 }
 0x146   :  { %v463_v48 = vrot.slane %v462_v45, 4  ;;  %v460_v49 = vmul.f32 %v456_v36, %v454_v46  ;;  %1075 = vmatprep.subr.bf16.mxu0 %v1177_v3 }
 0x147   :  { %p1151_p5 = por %p1150_p4, %p1149_p3 }
 0x148   :  { %v464_v50 = vadd.f32 %v463_v48, %v462_v45  ;;  %v469_v51 = vadd.f32 %v461_v47, %v460_v49 }
 0x149   :  { %1077 = vmatpush3.bf16.msra.mxu0 %v1076_v18  ;;  %p1152_p6 = pnand %p1151_p5, %p1145_p2 }
 0x14a   :  { %v465_v52 = vrot.slane %v464_v50, 2  ;;  %v470_v53 = vrot.slane %v469_v51, 4  ;;  %1078 = vmatprep.subr.bf16.mxu0 %v1177_v3 }
 0x14c   :  { %v466_v54 = vadd.f32 %v465_v52, %v464_v50  ;;  %v471_v55 = vadd.f32 %v470_v53, %v469_v51 }
 0x14d   :  { %1080 = vmatpush3.bf16.msra.mxu0 %v1079_v21 }
 0x14e   :  { %v472_v56 = vrot.slane %v471_v55, 2  ;;  %v467_v57 = vrot.slane %v466_v54, 1  ;;  %1081 = vmatprep.subr.bf16.mxu0 %v1177_v3 }
 0x150   :  { %v473_v58 = vadd.f32 %v472_v56, %v471_v55  ;;  %v468_v61 = vadd.f32 %v467_v57, %v466_v54 }
 0x151   :  { %1083 = vmatpush3.bf16.msra.mxu0 %v1082_v24 }
 0x152   :  { %v474_v59 = vrot.slane %v473_v58, 1 }
 0x154   :  { %v475_v62 = vadd.f32 %v474_v59, %v473_v58 }
 0x156   :  { %v511_v63 = vsel %vm510_vm0, %v475_v62, %v468_v61 }
 0x157   :  { %578 = vmatmul.mubr.f32.vlgmr.msra.gmra.mrb[8].mxu1 %v511_v63 }
 0x22a   :  { %v579_v26 = vpop.f32.mrb[8].mxu1 }
 0x22b   :  { %v589_v27 = vadd.f32 %v730_v25, %v579_v26  ;;  %v581_v28 = vpop.f32.mrb[9].mxu1 }
 0x22c   :  { %v601_v33 = vadd.f32 %v732_v32, %v581_v28 }
 0x22d   :  { %v731_v29 = vmul.f32 -1.442695, %v589_v27 }
 0x22e   :  { %v602_v34 = vmax.f32 %v601_v33, 0.0 }
 0x22f   :  { %1092 = vpow2.f32 %v731_v29 }
 0x239   :  { %v1093_v30 = vpop.eup %1092 }
 0x23a   :  { %v593_v31 = vadd.f32 1.0, %v1093_v30 }
 0x23c   :  { %1094 = vrcp.f32 %v593_v31 }
 0x246   :  { %v1095_v35 = vpop.eup %1094 }
 0x247   :  { %v603_v60 = vmul.f32 %v1095_v35, %v602_v34  ;;  %v604_v36 = vsub.f32 1.0, %v1095_v35 }
 0x249   :  { %v605_v37 = vmul.f32 %v604_v36, %v511_v63 }
 0x24b   :  { %v606_v38 = vadd.f32 %v605_v37, %v603_v60 }
 0x24d   :  { %930 = vmatmul.mubr.f32.vlgmr.msra.gmra.mrb[12].mxu0 %v606_v38 }
 0x320   :  { %v694_v40 = vpop.f32.mrb[12].mxu0 }
 0x321   :  { %v695_v41 = vadd.f32 %v733_v39, %v694_v40  ;;  %v931_v42 = vpop.f32.mrb[13].mxu0 }
 0x323   :  { %v699_v43 = vsel %vm698_vm2, %v695_v41, -inf }
 0x324   :  { %700 = vmax.xlane.f32.xlu0 %v699_v43 }
 0x3b1   :  { %v701_v44 = vpop.xlane.xlu0 %700 }
 0x3b2   :  { %v702_v45 = vsub.f32 %v695_v41, %v701_v44 }
 0x3b4   :  { %v703_v46 = vmul.f32 1.442695, %v702_v45 }
 0x3b6   :  { %1096 = vpow2.f32 %v703_v46 }
 0x3c0   :  { %v1097_v47 = vpop.eup %1096 }
 0x3c1   :  { %v705_v48 = vsel %vm698_vm2, %v1097_v47, 0.0 }
 0x3c2   :  { %706 = vadd.xlane.f32.xlu0 %v705_v48 }
 0x44f   :  { %v707_v49 = vpop.xlane.xlu0 %706 }
 0x450   :  { %1098 = vlog2.f32 %v707_v49 }
 0x45a   :  { %v1099_v50 = vpop.eup %1098 }
 0x45b   :  { %v709_v51 = vmul.f32 0.6931472, %v1099_v50 }
 0x45d   :  { %v710_v52 = vadd.f32 %v709_v51, %v701_v44 }
 0x45f   :  { %v711_v53 = vsub.f32 %v695_v41, %v710_v52 }
 0x461   :  { %712 = vst [vmem:[#allocation8] sm:$0x3] %v711_v53 }
 0x462   :  { %1155 = shalt.err (!%p1152_p6)
}
 0x463   :  { %s1156_s8 = scalar_lea.hbm %s1433_s6, 32 }
 0x464   :  { %p1157_p7 = scmp.ne.s32.totalorder %s1433_s6, %s1156_s8  ;;  %p1160_p8 = scmp.lt.u32.totalorder %s1156_s8, %s1433_s6 }
 0x466   :  { %p1162_p9 = pnand %p1160_p8, %p1157_p7 }
 0x468   :  { %1165 = shalt.err (!%p1162_p9)
}
 0x469   :  { %722 = dma.vmem_to_hbm [thread:$0]  %s720_s29, 32, %s1433_s6, [#allocation5]  }
 0x46a   :  { %1170 = dma.done.wait [#allocation5], 32  }
 0x46b   :  { %1171 = vsyncadd [#allocation5], 4294967264 }
 0x46c   :  { %726 = vsyncpa [#allocation4], 1 }
 0x46d   :  { %727 = vsyncpa [#allocation7], 1 }
 0x46e   :  { %728 = vsyncpa [#allocation5], 1 }

</bundles_post_ra>
